<compile_context>
chip_gen: v5e
topology: v5e:2x2
jax: 0.10.0
libtpu: 0.0.40
codegen_flags: <defaults>
</compile_context>

<pallas_src>
import jax
import jax.numpy as jnp
from jax import lax
from jax.experimental import pallas as pl
from jax.experimental.pallas import tpu as pltpu

KERNEL_SIZE = 5
_TARGET_BLOCK_BYTES = 4 << 20   # ~4 MiB of in+out+scratch per grid step


def gaussian_marginals(weights_x, weights_y, kernel_size=KERNEL_SIZE):
    """Separable filter taps (plain-JAX glue), mirroring the PyTorch module.

      exponent   = -(arange(K) - K//2)**2
      marginal_x = softmax(exponent * weights_x)   # applied along H (kh)
      marginal_y = softmax(exponent * weights_y)   # applied along W (kw)
      filters[i, j] = marginal_x[i] * marginal_y[j]
    """
    idx = jnp.arange(kernel_size, dtype=jnp.float32)
    exponent = -((idx - kernel_size // 2) ** 2)
    m_h = jax.nn.softmax(exponent * weights_x)     # (K,) taps along H
    m_w = jax.nn.softmax(exponent * weights_y)     # (K,) taps along W
    return m_h, m_w


def _sep_gaussian_kernel(m_h_ref, m_w_ref, x_ref, o_ref, tmp_ref):
    """Separable K-tap x K-tap depthwise conv on a (bp, H, W) plane block.

    m_h_ref, m_w_ref: (K,) f32 taps in SMEM (H taps, W taps).
    x_ref:   (bp, H, W)        input block, W on the lane axis.
    o_ref:   (bp, Hout, Wout)  output block.
    tmp_ref: (bp, Hout, W) f32 VMEM scratch holding the vertical-pass result.
    """
    k = m_h_ref.shape[0]
    h_out = o_ref.shape[1]
    w_out = o_ref.shape[2]

    # Pass 1: vertical (H, sublane axis).  Per-tap ref-sliced loads; two
    # partial accumulators break the serial add chain.
    acc_a = m_h_ref[0] * x_ref[:, 0:h_out, :].astype(jnp.float32)
    acc_b = m_h_ref[1] * x_ref[:, 1:1 + h_out, :].astype(jnp.float32)
    for dy in range(2, k):                      # static, fully unrolled
        term = m_h_ref[dy] * x_ref[:, dy:dy + h_out, :].astype(jnp.float32)
        if dy % 2 == 0:
            acc_a = acc_a + term
        else:
            acc_b = acc_b + term
    tmp_ref[...] = acc_a + acc_b                # (bp, Hout, W) f32, in VMEM

    # Pass 2: horizontal (W, lane axis).  Ref-sliced reads from the VMEM
    # scratch so lane realignment happens on the load path, not via hidden
    # VMEM copies of value slices.
    acc_a = m_w_ref[0] * tmp_ref[:, :, 0:w_out]
    acc_b = m_w_ref[1] * tmp_ref[:, :, 1:1 + w_out]
    for dx in range(2, k):
        term = m_w_ref[dx] * tmp_ref[:, :, dx:dx + w_out]
        if dx % 2 == 0:
            acc_a = acc_a + term
        else:
            acc_b = acc_b + term
    o_ref[...] = (acc_a + acc_b).astype(o_ref.dtype)


def gaussian_conv2d(x, weights_x=1.0, weights_y=1.0, kernel_size=KERNEL_SIZE):
    """x: (N, C, H, W) -> (N, C, H-K+1, W-K+1), same dtype as x."""
    n, c, h, w = x.shape
    k = kernel_size
    h_out, w_out = h - k + 1, w - k + 1
    m_h, m_w = gaussian_marginals(jnp.float32(weights_x),
                                  jnp.float32(weights_y), k)

    p = n * c
    x_phw = x.reshape(p, h, w)          # free reshape, no HBM data movement

    itemsize = jnp.dtype(x.dtype).itemsize
    # Bytes one plane contributes to a grid step (input + output + scratch).
    per_plane = h * w * itemsize + h_out * w_out * itemsize + h_out * w * 4
    # Size each step to move a few MiB (tiny steps are dominated by the
    # ~0.35us per-step pipeline overhead), but keep >= 2 grid steps so the
    # "parallel" axis feeds both v7x TensorCores.
    bp = max(1, min(p, _TARGET_BLOCK_BYTES // per_plane))
    if p >= 2:
        bp = min(bp, pl.cdiv(p, 2))
    grid = (pl.cdiv(p, bp),)

    # Double-buffered in/out blocks + f32 scratch + headroom for elementwise
    # temporaries the compiler may stage in VMEM.
    vmem_need = bp * (2 * h * w * itemsize
                      + 2 * h_out * w_out * itemsize
                      + 7 * h_out * w * 4)
    vmem_limit = int(min(40 << 20, max(16 << 20, 2 * vmem_need)))

    # TODO(synk): for single planes too large for VMEM even at bp=1 (e.g.
    # >4Kx4K images), add an H-strip grid axis with a (K-1)-row halo via
    # manual double-buffered DMA (memory_space=pl.ANY + make_async_copy).
    out_phw = pl.pallas_call(
        _sep_gaussian_kernel,
        out_shape=jax.ShapeDtypeStruct((p, h_out, w_out), x.dtype),
        grid=grid,
        in_specs=[
            pl.BlockSpec(memory_space=pltpu.MemorySpace.SMEM),   # H taps
            pl.BlockSpec(memory_space=pltpu.MemorySpace.SMEM),   # W taps
            pl.BlockSpec((bp, h, w), lambda b: (b, 0, 0)),
        ],
        out_specs=pl.BlockSpec((bp, h_out, w_out), lambda b: (b, 0, 0)),
        scratch_shapes=[pltpu.VMEM((bp, h_out, w), jnp.float32)],
        compiler_params=pltpu.CompilerParams(
            dimension_semantics=("parallel",),
            vmem_limit_bytes=vmem_limit),
    )(m_h, m_w, x_phw)

    return out_phw.reshape(n, c, h_out, w_out)


if __name__ == "__main__":
    key = jax.random.PRNGKey(0)
    N, C, H, W = 2, 4, 16, 16
    x = jax.random.normal(key, (N, C, H, W), dtype=jnp.float32)

    # Module's reset_parameters sets both weights to 1.0.
    weights_x = 1.0
    weights_y = 1.0

    out = gaussian_conv2d(x, weights_x, weights_y, KERNEL_SIZE)
    out = jax.block_until_ready(out)

    # Pure-JAX reference (lax depthwise conv) to validate semantics.
    m_h, m_w = gaussian_marginals(jnp.float32(weights_x),
                                  jnp.float32(weights_y), KERNEL_SIZE)
    filt = m_h[:, None] * m_w[None, :]                       # (K, K)
    filt_oihw = jnp.broadcast_to(filt, (C, 1, KERNEL_SIZE, KERNEL_SIZE))
    ref = lax.conv_general_dilated(
        x, filt_oihw, window_strides=(1, 1), padding="VALID",
        dimension_numbers=("NCHW", "OIHW", "NCHW"), feature_group_count=C)

    assert out.shape == (N, C, H - KERNEL_SIZE + 1, W - KERNEL_SIZE + 1), out.shape
    assert jnp.allclose(out, ref, rtol=1e-4, atol=1e-5), "mismatch vs reference"
    print("KERNEL_OK")
</pallas_src>

<mosaic_0001>
module attributes {stable_mosaic.version = 11 : i64} {
  func.func @_sep_gaussian_kernel(%arg0: i32, %arg1: memref<5xf32, #tpu.memory_space<smem>>, %arg2: memref<5xf32, #tpu.memory_space<smem>>, %arg3: memref<4x16x16xf32, #tpu.memory_space<vmem>>, %arg4: memref<4x12x12xf32, #tpu.memory_space<vmem>>, %arg5: memref<4x12x16xf32, #tpu.memory_space<vmem>>) attributes {dimension_semantics = [#tpu.dimension_semantics<parallel>], iteration_bounds = array<i64: 2>, scalar_prefetch = 0 : i64, scratch_operands = 1 : i64, tpu.core_type = #tpu.core_type<tc>, window_params = [{transform_indices = @transform_0, window_bounds = array<i64: 5>}, {transform_indices = @transform_1, window_bounds = array<i64: 5>}, {transform_indices = @transform_2, window_bounds = array<i64: 4, 16, 16>}, {transform_indices = @transform_3, window_bounds = array<i64: 4, 12, 12>}]} {
    %c0 = arith.constant 0 : index
    %0 = memref.load %arg1[%c0] : memref<5xf32, #tpu.memory_space<smem>>
    %c0_0 = arith.constant 0 : index
    %c0_1 = arith.constant 0 : index
    %c0_2 = arith.constant 0 : index
    %1 = vector.load %arg3[%c0_0, %c0_1, %c0_2] : memref<4x16x16xf32, #tpu.memory_space<vmem>>, vector<4x12x16xf32>
    %2 = vector.broadcast %0 : f32 to vector<4x12x16xf32>
    %3 = arith.mulf %2, %1 : vector<4x12x16xf32>
    %c1 = arith.constant 1 : index
    %4 = memref.load %arg1[%c1] : memref<5xf32, #tpu.memory_space<smem>>
    %c0_3 = arith.constant 0 : index
    %c1_4 = arith.constant 1 : index
    %c0_5 = arith.constant 0 : index
    %5 = vector.load %arg3[%c0_3, %c1_4, %c0_5] : memref<4x16x16xf32, #tpu.memory_space<vmem>>, vector<4x12x16xf32>
    %6 = vector.broadcast %4 : f32 to vector<4x12x16xf32>
    %7 = arith.mulf %6, %5 : vector<4x12x16xf32>
    %c2 = arith.constant 2 : index
    %8 = memref.load %arg1[%c2] : memref<5xf32, #tpu.memory_space<smem>>
    %c0_6 = arith.constant 0 : index
    %c2_7 = arith.constant 2 : index
    %c0_8 = arith.constant 0 : index
    %9 = vector.load %arg3[%c0_6, %c2_7, %c0_8] : memref<4x16x16xf32, #tpu.memory_space<vmem>>, vector<4x12x16xf32>
    %10 = vector.broadcast %8 : f32 to vector<4x12x16xf32>
    %11 = arith.mulf %10, %9 : vector<4x12x16xf32>
    %12 = arith.addf %3, %11 : vector<4x12x16xf32>
    %c3 = arith.constant 3 : index
    %13 = memref.load %arg1[%c3] : memref<5xf32, #tpu.memory_space<smem>>
    %c0_9 = arith.constant 0 : index
    %c3_10 = arith.constant 3 : index
    %c0_11 = arith.constant 0 : index
    %14 = vector.load %arg3[%c0_9, %c3_10, %c0_11] : memref<4x16x16xf32, #tpu.memory_space<vmem>>, vector<4x12x16xf32>
    %15 = vector.broadcast %13 : f32 to vector<4x12x16xf32>
    %16 = arith.mulf %15, %14 : vector<4x12x16xf32>
    %17 = arith.addf %7, %16 : vector<4x12x16xf32>
    %c4 = arith.constant 4 : index
    %18 = memref.load %arg1[%c4] : memref<5xf32, #tpu.memory_space<smem>>
    %c0_12 = arith.constant 0 : index
    %c4_13 = arith.constant 4 : index
    %c0_14 = arith.constant 0 : index
    %19 = vector.load %arg3[%c0_12, %c4_13, %c0_14] : memref<4x16x16xf32, #tpu.memory_space<vmem>>, vector<4x12x16xf32>
    %20 = vector.broadcast %18 : f32 to vector<4x12x16xf32>
    %21 = arith.mulf %20, %19 : vector<4x12x16xf32>
    %22 = arith.addf %12, %21 : vector<4x12x16xf32>
    %23 = arith.addf %22, %17 : vector<4x12x16xf32>
    %c0_15 = arith.constant 0 : index
    %c0_16 = arith.constant 0 : index
    %c0_17 = arith.constant 0 : index
    %24 = vector.load %arg5[%c0_15, %c0_16, %c0_17] : memref<4x12x16xf32, #tpu.memory_space<vmem>>, vector<4x12x16xf32>
    tpu.vector_store %arg5[%c0_15, %c0_16, %c0_17], %23 {strides = array<i32>} : memref<4x12x16xf32, #tpu.memory_space<vmem>>, vector<4x12x16xf32>,
    %c0_18 = arith.constant 0 : index
    %25 = memref.load %arg2[%c0_18] : memref<5xf32, #tpu.memory_space<smem>>
    %c0_19 = arith.constant 0 : index
    %c0_20 = arith.constant 0 : index
    %c0_21 = arith.constant 0 : index
    %26 = vector.load %arg5[%c0_19, %c0_20, %c0_21] : memref<4x12x16xf32, #tpu.memory_space<vmem>>, vector<4x12x12xf32>
    %27 = vector.broadcast %25 : f32 to vector<4x12x12xf32>
    %28 = arith.mulf %27, %26 : vector<4x12x12xf32>
    %c1_22 = arith.constant 1 : index
    %29 = memref.load %arg2[%c1_22] : memref<5xf32, #tpu.memory_space<smem>>
    %c0_23 = arith.constant 0 : index
    %c0_24 = arith.constant 0 : index
    %c1_25 = arith.constant 1 : index
    %30 = vector.load %arg5[%c0_23, %c0_24, %c1_25] : memref<4x12x16xf32, #tpu.memory_space<vmem>>, vector<4x12x12xf32>
    %31 = vector.broadcast %29 : f32 to vector<4x12x12xf32>
    %32 = arith.mulf %31, %30 : vector<4x12x12xf32>
    %c2_26 = arith.constant 2 : index
    %33 = memref.load %arg2[%c2_26] : memref<5xf32, #tpu.memory_space<smem>>
    %c0_27 = arith.constant 0 : index
    %c0_28 = arith.constant 0 : index
    %c2_29 = arith.constant 2 : index
    %34 = vector.load %arg5[%c0_27, %c0_28, %c2_29] : memref<4x12x16xf32, #tpu.memory_space<vmem>>, vector<4x12x12xf32>
    %35 = vector.broadcast %33 : f32 to vector<4x12x12xf32>
    %36 = arith.mulf %35, %34 : vector<4x12x12xf32>
    %37 = arith.addf %28, %36 : vector<4x12x12xf32>
    %c3_30 = arith.constant 3 : index
    %38 = memref.load %arg2[%c3_30] : memref<5xf32, #tpu.memory_space<smem>>
    %c0_31 = arith.constant 0 : index
    %c0_32 = arith.constant 0 : index
    %c3_33 = arith.constant 3 : index
    %39 = vector.load %arg5[%c0_31, %c0_32, %c3_33] : memref<4x12x16xf32, #tpu.memory_space<vmem>>, vector<4x12x12xf32>
    %40 = vector.broadcast %38 : f32 to vector<4x12x12xf32>
    %41 = arith.mulf %40, %39 : vector<4x12x12xf32>
    %42 = arith.addf %32, %41 : vector<4x12x12xf32>
    %c4_34 = arith.constant 4 : index
    %43 = memref.load %arg2[%c4_34] : memref<5xf32, #tpu.memory_space<smem>>
    %c0_35 = arith.constant 0 : index
    %c0_36 = arith.constant 0 : index
    %c4_37 = arith.constant 4 : index
    %44 = vector.load %arg5[%c0_35, %c0_36, %c4_37] : memref<4x12x16xf32, #tpu.memory_space<vmem>>, vector<4x12x12xf32>
    %45 = vector.broadcast %43 : f32 to vector<4x12x12xf32>
    %46 = arith.mulf %45, %44 : vector<4x12x12xf32>
    %47 = arith.addf %37, %46 : vector<4x12x12xf32>
    %48 = arith.addf %47, %42 : vector<4x12x12xf32>
    %c0_38 = arith.constant 0 : index
    %c0_39 = arith.constant 0 : index
    %c0_40 = arith.constant 0 : index
    %49 = vector.load %arg4[%c0_38, %c0_39, %c0_40] : memref<4x12x12xf32, #tpu.memory_space<vmem>>, vector<4x12x12xf32>
    tpu.vector_store %arg4[%c0_38, %c0_39, %c0_40], %48 {strides = array<i32>} : memref<4x12x12xf32, #tpu.memory_space<vmem>>, vector<4x12x12xf32>,
    return
  }
  func.func @transform_0(%arg0: i32) -> i32 {
    %c0_i32 = arith.constant 0 : i32
    %c0_i32_0 = arith.constant 0 : i32
    return %c0_i32 : i32
  }
  func.func @transform_1(%arg0: i32) -> i32 {
    %c0_i32 = arith.constant 0 : i32
    %c0_i32_0 = arith.constant 0 : i32
    return %c0_i32 : i32
  }
  func.func @transform_2(%arg0: i32) -> (i32, i32, i32) {
    %c0_i32 = arith.constant 0 : i32
    %c0_i32_0 = arith.constant 0 : i32
    %c0_i32_1 = arith.constant 0 : i32
    return %arg0, %c0_i32, %c0_i32_0 : i32, i32, i32
  }
  func.func @transform_3(%arg0: i32) -> (i32, i32, i32) {
    %c0_i32 = arith.constant 0 : i32
    %c0_i32_0 = arith.constant 0 : i32
    %c0_i32_1 = arith.constant 0 : i32
    return %arg0, %c0_i32, %c0_i32_0 : i32, i32, i32
  }
}

</mosaic_0001>

<bundles_post_ra>
// kernel: tpu_custom_call.1
= control target key start
LH: loop header
LB: loop body
LE: loop exit
PB: predicated region body
PF: predicated region fallthrough
CT: control target
= control target key end

     0   :  { %8 = vsyncpa [#allocation5], 0  ;;  %s1251_s0 = inlined_call_operand.hbm [shape: f32[5], index: 0, kind: input, shape index: {}]   ;;  %s1252_s1 = inlined_call_operand.hbm [shape: f32[5], index: 1, kind: input, shape index: {}]   ;;  %s1253_s2 = inlined_call_operand.hbm [shape: f32[8,16,16], index: 2, kind: input, shape index: {}]   ;;  %s1254_s3 = inlined_call_operand.vmem [shape: f32[8,12,12], index: 3, kind: output, shape index: {}]  }
   0x1   :  { %9 = vsyncpa [#allocation7], 0 }
   0x2   :  { %10 = vsyncpa [#allocation4], 0 }
   0x3   :  { %12 = vsyncpa [#allocation4 + $0x1], 0  ;;  %s902_s12 = smov 0   ;;  %s904_s13 = smov 0  }
   0x4   :  { %s906_s14 = smov 0   ;;  %s908_s15 = smov 0  }
   0x5 LB: > { %s676_s16 = sadd.s32 4294967295, %s873_s15   ;;  %s922_s17 = sadd.s32 1, %s873_s15   ;;  %s873_s15 = sphi %s908_s15, %s1263_s15   ;;  %s869_s14 = sphi %s906_s14, %s1262_s14   ;;  %s865_s13 = sphi %s904_s13, %s1261_s13   ;;  %s861_s12 = sphi %s902_s12, %s1260_s12  }
   0x6   : > { %s64_s18 = ssub.s32 %s873_s15, %s922_s17  ;;  %s67_s19 = sadd.s32 1, %s869_s14 }
   0x7   : > { %p65_p0 = scmp.eq.s32.totalorder %s64_s18, 0  ;;  %p74_p1 = scmp.ne.s32.totalorder %s869_s14, %s865_s13 }
   0x8   : > { %p75_p2 = scmp.eq.s32.totalorder %s873_s15, 0  ;;  %p80_p3 = scmp.ne.s32.totalorder %s865_s13, %s861_s12 }
   0x9   : > { %s932_s20 = scalar_select %p65_p0, %s869_s14, %s67_s19  }
   0xa   : > { %p934_p4 = por %p75_p2, %p74_p1  ;;  %p940_p5 = scmp.eq.s32.totalorder %s676_s16, 0 }
   0xb   : > { %p678_p6 = scmp.ge.s32.totalorder %s873_s15, 1  ;;  %p117_p7 = scmp.lt.s32.totalorder %s873_s15, 3 }
   0xc   : > { %p948_p8 = por %p940_p5, %p80_p3  ;;  %s129_s27 = sshll.u32 %s1251_s0, 4  ;;  %s130_s27 = int_to_ptr.hbm [resolvable:$true] %s129_s27 }
   0xd   : > { %p952_p9 = pnand %p678_p6, %p117_p7  ;;  %p729_p11 = scmp.lt.s32.totalorder %s873_s15, 2 }
   0xe   : > { %s139_s30 = sshll.u32 %s1252_s1, 4  ;;  %s150_s5 = sand.u32 1, %s869_s14   ;;  %s140_s30 = int_to_ptr.hbm [resolvable:$true] %s139_s30 }
   0xf   : > { %p716_p10 = pneg %p952_p9  ;;  %p969_p13 = pnand %p729_p11, %p934_p4 }
  0x10   : > { %s875_s6 = smov [#allocation3]   ;;  %s876_s7 = smov [#allocation6]  }
  0x11   : > { %p717_p12 = pnand %p716_p10, %p940_p5  ;;  %s682_s8 = sshll.u32 %s150_s5, 6 }
  0x12   : > { %s704_s9 = sshll.u32 %s873_s15, 6  ;;  %s154_s19 = scalar_lea.vmem [#allocation8], %s682_s8 }
  0x13   : > { %719 = dma.hbm_to_smem (!%p717_p12), %s130_s27, 16, %s875_s6, [#allocation5]  }
  0x14   : > { %722 = dma.hbm_to_smem (!%p717_p12), %s140_s30, 16, %s876_s7, [#allocation7]  }
  0x15   : > { %s160_s12 = scalar_lea.hbm %s1253_s2, %s704_s9  ;;  %s163_s25 = sshll.u32 %s154_s19, 4  ;;  %s164_s25 = int_to_ptr.vmem [resolvable:$true] %s163_s25 }
  0x16   : > { %s161_s18 = sshll.u32 %s160_s12, 4  ;;  %s151_s21 = scalar_lea.sflag [#allocation4], %s150_s5  ;;  %s162_s18 = int_to_ptr.hbm [resolvable:$true] %s161_s18 }
  0x17   : > { %s801_s26 = sshra.s32 %s162_s18, 4  ;;  %p805_p1 = pneg %p969_p13  ;;  %s802_s26 = int_to_ptr.hbm [resolvable:$true] %s801_s26 }
  0x18   : > { %s803_s28 = scalar_lea.hbm %s802_s26, 64  ;;  %s808_s30 = scalar_lea.hbm %s1253_s2, 128 }
  0x19   : > { %p804_p0 = scmp.ne.s32.totalorder %s802_s26, %s803_s28  ;;  %p809_p4 = scmp.lt.s32.totalorder %s802_s26, %s1253_s2 }
  0x1a   : > { %p810_p6 = scmp.lt.s32.totalorder %s808_s30, %s803_s28 }
  0x1b   : > { %p806_p2 = pnand %p805_p1, %p804_p0 }
  0x1c   : > { %p811_p7 = por %p810_p6, %p809_p4 }
  0x1d   : > { %p807_p3 = pneg %p806_p2 }
  0x1f   : > { %p812_p10 = pnand %p811_p7, %p807_p3 }
  0x21   : > { %815 = shalt.err (!%p812_p10)
}
  0x22   : > { %s877_s5 = smov 128   ;;  %s878_s8 = smov 8  }
  0x23   : > { %726 = dma.hbm_to_vmem [thread:$0]  (!%p969_p13), %s162_s18, 1024, %s164_s25, %s151_s21, %s877_s5, %s877_s5, %s878_s8  }
  0x24   : > { %175 = sbr.rel (%p952_p9) target bundleno = 336 (0x150), region = 32 }
  0x29   : > { %848 = dma.done.wait (%p940_p5), [#allocation5], 16  }
  0x2a   : > { %850 = vsyncadd (%p940_p5), [#allocation5], 4294967280 }
  0x2b   : > { %852 = dma.done.wait (%p940_p5), [#allocation7], 16  }
  0x2c   : > { %854 = vsyncadd (%p940_p5), [#allocation7], 4294967280  ;;  %s187_s9 = sand.u32 1, %s865_s13  }
  0x2d   : > { %s689_s4 = sshll.u32 %s187_s9, 6  ;;  %s188_s10 = scalar_lea.sflag [#allocation4], %s187_s9 }
  0x2e   : > { %s999_s11 = scalar_lea.vmem [#allocation8], %s689_s4 }
  0x2f   : > { %856 = dma.done.wait (%p948_p8), %s188_s10, 1024  }
  0x30   : > { %858 = vsyncadd (%p948_p8), %s188_s10, 4294966272 }
  0x31   : > { %197 = sfence }
  0x32   : > { %s225_s24 = sld [smem:[#allocation3]]  ;;  %v228_v0 = vld [vmem:[%s999_s11 + $0x10] sm:$0xff]  ;;  %v226_v2 = vld [vmem:[%s999_s11] sm:$0xff]  ;;  %v229_v3 = vld [vmem:[%s999_s11 + $0x18] sm:$0xf]  ;;  %vm347_vm0 = vcmask 130048  }
  0x33   : > { %s693_s22 = sld [smem:[#allocation3 + $0x1]]  ;;  %v246_v1 = vld [vmem:[%s999_s11 + $0x11] sm:$0xff]  ;;  %v244_v5 = vld [vmem:[%s999_s11 + $0x1] sm:$0xff]  ;;  %v247_v6 = vld [vmem:[%s999_s11 + $0x19] sm:$0xf]  ;;  %vm349_vm1 = vcmask 125952  }
  0x34   : > { %s694_s12 = sld [smem:[#allocation3 + $0x2]]  ;;  %v264_v4 = vld [vmem:[%s999_s11 + $0x12] sm:$0xff]  ;;  %v262_v8 = vld [vmem:[%s999_s11 + $0x2] sm:$0xff]  ;;  %v265_v9 = vld [vmem:[%s999_s11 + $0x1a] sm:$0xf]  ;;  %s879_s21 = smov 126  }
  0x35   : > { %s695_s18 = sld [smem:[#allocation3 + $0x3]]  ;;  %v290_v12 = vld [vmem:[%s999_s11 + $0x13] sm:$0xff]  ;;  %v288_v14 = vld [vmem:[%s999_s11 + $0x3] sm:$0xff]  ;;  %v291_v16 = vld [vmem:[%s999_s11 + $0x1b] sm:$0xf]  ;;  %s880_s28 = smov 124  }
  0x36   : > { %s1007_s19 = sld [smem:[#allocation3 + $0x4]]  ;;  %v316_v19 = vld [vmem:[%s999_s11 + $0x14] sm:$0xff]  ;;  %v314_v25 = vld [vmem:[%s999_s11 + $0x4] sm:$0xff]  ;;  %v317_v31 = vld [vmem:[%s999_s11 + $0x1c] sm:$0xf]  ;;  %s881_s29 = smov 127  }
  0x37   : > { %s1012_s23 = sld [smem:[#allocation6 + $0x2]]  ;;  %v227_v36 = vld [vmem:[%s999_s11 + $0x8] sm:$0xf]  ;;  %v315_v44 = vld [vmem:[%s999_s11 + $0xc] sm:$0xf]  ;;  %v230_v49 = vld [vmem:[%s999_s11 + $0x20] sm:$0xff] }
  0x38   : > { %v1016_v7 = vstv %s225_s24  ;;  %s1019_s25 = sld [smem:[#allocation6 + $0x3]]  ;;  %v245_v37 = vld [vmem:[%s999_s11 + $0x9] sm:$0xf]  ;;  %v248_v50 = vld [vmem:[%s999_s11 + $0x21] sm:$0xff]  ;;  %v232_v62 = vld [vmem:[%s999_s11 + $0x30] sm:$0xff]  ;;  %s690_s6 = sshll.u32 %s676_s16, 2 }
  0x39   : > { %v237_v10 = vmul.f32 %v1016_v7, %v228_v0  ;;  %v1023_v11 = vstv %s693_s22  ;;  %v235_v13 = vmul.f32 %v1016_v7, %v226_v2  ;;  %v238_v15 = vmul.f32 %v1016_v7, %v229_v3  ;;  %v263_v38 = vld [vmem:[%s999_s11 + $0xa] sm:$0xf]  ;;  %v266_v55 = vld [vmem:[%s999_s11 + $0x22] sm:$0xff]  ;;  %v250_v63 = vld [vmem:[%s999_s11 + $0x31] sm:$0xff]  ;;  %s700_s26 = sld [smem:[#allocation6 + $0x4]]  ;;  %p219_p5 = scmp.lt.s32.totalorder %s690_s6, 7 }
  0x3a   : > { %v255_v17 = vmul.f32 %v1023_v11, %v246_v1  ;;  %v1031_v18 = vstv %s694_s12  ;;  %v253_v20 = vmul.f32 %v1023_v11, %v244_v5  ;;  %v256_v21 = vmul.f32 %v1023_v11, %v247_v6  ;;  %v289_v43 = vld [vmem:[%s999_s11 + $0xb] sm:$0xf]  ;;  %v292_v56 = vld [vmem:[%s999_s11 + $0x23] sm:$0xff]  ;;  %v294_v5 = vld [vmem:[%s999_s11 + $0x33] sm:$0xff]  ;;  %s697_s27 = sld [smem:[#allocation6 + $0x1]] }
  0x3b   : > { %v273_v22 = vmul.f32 %v1031_v18, %v264_v4  ;;  %v1037_v23 = vstv %s695_s18  ;;  %v271_v24 = vmul.f32 %v1031_v18, %v262_v8  ;;  %v274_v26 = vmul.f32 %v1031_v18, %v265_v9  ;;  %v318_v61 = vld [vmem:[%s999_s11 + $0x24] sm:$0xff]  ;;  %v268_v4 = vld [vmem:[%s999_s11 + $0x32] sm:$0xff]  ;;  %s357_s30 = sld [smem:[#allocation6]]  ;;  %s1265_s6 = smov (!%p219_p5, %s690_s6), 7 }
  0x3c   : > { %v299_v27 = vmul.f32 %v1037_v23, %v290_v12  ;;  %v1044_v28 = vstv %s1007_s19  ;;  %v297_v29 = vmul.f32 %v1037_v23, %v288_v14  ;;  %v300_v30 = vmul.f32 %v1037_v23, %v291_v16  ;;  %v233_v6 = vld [vmem:[%s999_s11 + $0x38] sm:$0xf]  ;;  %s705_s7 = sshll.u32 %s1265_s6, 4 }
  0x3d   : > { %v281_v32 = vadd.f32 %v273_v22, %v237_v10  ;;  %v325_v33 = vmul.f32 %v1044_v28, %v316_v19  ;;  %v1051_v34 = vstv %s1012_s23  ;;  %v279_v35 = vadd.f32 %v271_v24, %v235_v13  ;;  %v320_v13 = vld [vmem:[%s999_s11 + $0x34] sm:$0xff]  ;;  %v321_v22 = vld [vmem:[%s999_s11 + $0x3c] sm:$0xf]  ;;  %s1212_s9 = scalar_lea.vmem %s1254_s3, %s705_s7 }
  0x3e   : > { %v307_v39 = vadd.f32 %v299_v27, %v255_v17  ;;  %v305_v40 = vadd.f32 %v297_v29, %v253_v20  ;;  %v323_v41 = vmul.f32 %v1044_v28, %v314_v25  ;;  %v1058_v42 = vstv %s1019_s25  ;;  %v251_v14 = vld [vmem:[%s999_s11 + $0x39] sm:$0xf]  ;;  %v231_v29 = vld [vmem:[%s999_s11 + $0x28] sm:$0xf] }
  0x3f   : > { %v333_v45 = vadd.f32 %v325_v33, %v281_v32  ;;  %v282_v46 = vadd.f32 %v274_v26, %v238_v15  ;;  %v308_v47 = vadd.f32 %v300_v30, %v256_v21  ;;  %v326_v48 = vmul.f32 %v1044_v28, %v317_v31  ;;  %v269_v15 = vld [vmem:[%s999_s11 + $0x3a] sm:$0xf]  ;;  %v249_v30 = vld [vmem:[%s999_s11 + $0x29] sm:$0xf] }
  0x40   : > { %v331_v51 = vadd.f32 %v323_v41, %v279_v35  ;;  %v236_v52 = vmul.f32 %v1016_v7, %v227_v36  ;;  %v254_v53 = vmul.f32 %v1023_v11, %v245_v37  ;;  %v272_v54 = vmul.f32 %v1031_v18, %v263_v38  ;;  %v295_v21 = vld [vmem:[%s999_s11 + $0x3b] sm:$0xf]  ;;  %v267_v36 = vld [vmem:[%s999_s11 + $0x2a] sm:$0xf] }
  0x41   : > { %v341_v57 = vadd.f32 %v333_v45, %v307_v39  ;;  %v334_v58 = vadd.f32 %v326_v48, %v282_v46  ;;  %v298_v59 = vmul.f32 %v1037_v23, %v289_v43  ;;  %v324_v60 = vmul.f32 %v1044_v28, %v315_v44  ;;  %v293_v41 = vld [vmem:[%s999_s11 + $0x2b] sm:$0xf] }
  0x42   : > { %v339_v0 = vadd.f32 %v331_v51, %v305_v40  ;;  %v280_v1 = vadd.f32 %v272_v54, %v236_v52  ;;  %v239_v2 = vmul.f32 %v1016_v7, %v230_v49  ;;  %v257_v3 = vmul.f32 %v1023_v11, %v248_v50  ;;  %v319_v43 = vld [vmem:[%s999_s11 + $0x2c] sm:$0xf] }
  0x43   : > { %351 = vst.msk [vmem:[#allocation2 + $0x10] sm:$0xff] %vm347_vm0, %v341_v57  ;;  %v342_v8 = vadd.f32 %v334_v58, %v308_v47  ;;  %v306_v9 = vadd.f32 %v298_v59, %v254_v53  ;;  %v275_v10 = vmul.f32 %v1031_v18, %v266_v55  ;;  %v301_v12 = vmul.f32 %v1037_v23, %v292_v56 }
  0x44   : > { %348 = vst.msk [vmem:[#allocation2] sm:$0xff] %vm347_vm0, %v339_v0  ;;  %v332_v16 = vadd.f32 %v324_v60, %v280_v1  ;;  %v327_v17 = vmul.f32 %v1044_v28, %v318_v61  ;;  %v241_v19 = vmul.f32 %v1016_v7, %v232_v62  ;;  %v259_v20 = vmul.f32 %v1023_v11, %v250_v63 }
  0x45   : > { %352 = vst.msk [vmem:[#allocation2 + $0x18] sm:$0xf] %vm349_vm1, %v342_v8  ;;  %v283_v24 = vadd.f32 %v275_v10, %v239_v2  ;;  %v309_v25 = vadd.f32 %v301_v12, %v257_v3  ;;  %v277_v26 = vmul.f32 %v1031_v18, %v268_v4  ;;  %v303_v27 = vmul.f32 %v1037_v23, %v294_v5 }
  0x46   : > { %v340_v31 = vadd.f32 %v332_v16, %v306_v9  ;;  %v329_v32 = vmul.f32 %v1044_v28, %v320_v13  ;;  %v242_v33 = vmul.f32 %v1016_v7, %v233_v6  ;;  %v260_v35 = vmul.f32 %v1023_v11, %v251_v14 }
  0x47   : > { %v335_v37 = vadd.f32 %v327_v17, %v283_v24  ;;  %v285_v38 = vadd.f32 %v277_v26, %v241_v19  ;;  %v311_v39 = vadd.f32 %v303_v27, %v259_v20  ;;  %v278_v40 = vmul.f32 %v1031_v18, %v269_v15 }
  0x48   : > { %350 = vst.msk [vmem:[#allocation2 + $0x8] sm:$0xf] %vm349_vm1, %v340_v31  ;;  %v304_v44 = vmul.f32 %v1037_v23, %v295_v21  ;;  %v330_v45 = vmul.f32 %v1044_v28, %v321_v22  ;;  %v240_v46 = vmul.f32 %v1016_v7, %v231_v29  ;;  %v258_v47 = vmul.f32 %v1023_v11, %v249_v30 }
  0x49   : > { %v343_v48 = vadd.f32 %v335_v37, %v309_v25  ;;  %v337_v49 = vadd.f32 %v329_v32, %v285_v38  ;;  %v286_v50 = vadd.f32 %v278_v40, %v242_v33  ;;  %v276_v51 = vmul.f32 %v1031_v18, %v267_v36 }
  0x4a   : > { %v1110_v52 = vld [vmem:[#allocation2 + $0x10] sm:$0xff]  ;;  %v312_v53 = vadd.f32 %v304_v44, %v260_v35  ;;  %v302_v54 = vmul.f32 %v1037_v23, %v293_v41  ;;  %v328_v55 = vmul.f32 %v1044_v28, %v319_v43  ;;  %v376_v29 = vstv %s697_s27 }
  0x4b   : > { %v389_v56 = vmul.f32 %v1051_v34, %v1110_v52  ;;  %v1116_v57 = vld [vmem:[#allocation2] sm:$0xff]  ;;  %353 = vst.msk [vmem:[#allocation2 + $0x20] sm:$0xff] %vm347_vm0, %v343_v48  ;;  %v345_v7 = vadd.f32 %v337_v49, %v311_v39  ;;  %v338_v11 = vadd.f32 %v330_v45, %v286_v50  ;;  %v284_v59 = vadd.f32 %v276_v51, %v240_v46 }
  0x4c   : > { %v437_v58 = vmul.f32 %v1058_v42, %v1116_v57  ;;  %v387_v18 = vmul.f32 %v1051_v34, %v1116_v57  ;;  %v310_v60 = vadd.f32 %v302_v54, %v258_v47  ;;  %v1127_v28 = vld [vmem:[#allocation2 + $0x18] sm:$0xf]  ;;  %v439_v6 = vmul.f32 %v1058_v42, %v1110_v52 }
  0x4d   : > { %407 = vrot.lane.b32.xlu1 %v389_v56, %s879_s21  ;;  %355 = vst.msk [vmem:[#allocation2 + $0x30] sm:$0xff] %vm347_vm0, %v345_v7  ;;  %v346_v23 = vadd.f32 %v338_v11, %v312_v53  ;;  %v336_v61 = vadd.f32 %v328_v55, %v284_v59  ;;  %v390_v0 = vmul.f32 %v1051_v34, %v1127_v28  ;;  %vm577_vm2 = vcmask 93184  }
  0x4e   : > { %453 = vrot.lane.b32.xlu2 %v437_v58, %s879_s21  ;;  %403 = vrot.lane.b32.xlu0 %v387_v18, %s879_s21  ;;  %v440_v4 = vmul.f32 %v1058_v42, %v1127_v28  ;;  %v377_v30 = vmul.f32 %v376_v29, %v1116_v57  ;;  %v380_v48 = vmul.f32 %v376_v29, %v1127_v28  ;;  %vm575_vm3 = vcmask 97280  }
  0x4f   : > { %v1129_v62 = vld [vmem:[#allocation2 + $0x8] sm:$0xf]  ;;  %356 = vst.msk [vmem:[#allocation2 + $0x38] sm:$0xf] %vm349_vm1, %v346_v23  ;;  %v344_v63 = vadd.f32 %v336_v61, %v310_v60  ;;  %v379_v49 = vmul.f32 %v376_v29, %v1110_v52 }
  0x50   : > { %v438_v1 = vmul.f32 %v1058_v42, %v1129_v62  ;;  %v388_v2 = vmul.f32 %v1051_v34, %v1129_v62  ;;  %v378_v33 = vmul.f32 %v376_v29, %v1129_v62 }
  0x51   : > { %354 = vst.msk [vmem:[#allocation2 + $0x28] sm:$0xf] %vm349_vm1, %v344_v63  ;;  %v366_v63 = vstv %s357_s30 }
  0x52   : > { %v1142_v3 = vld [vmem:[#allocation2 + $0x20] sm:$0xff] }
  0x53   : > { %v441_v5 = vmul.f32 %v1058_v42, %v1142_v3  ;;  %v391_v16 = vmul.f32 %v1051_v34, %v1142_v3  ;;  %v381_v37 = vmul.f32 %v376_v29, %v1142_v3 }
  0x54   : > { %v1153_v8 = vld [vmem:[#allocation2 + $0x30] sm:$0xff] }
  0x55   : > { %409 = vrot.lane.b32.xlu1 %v390_v0, %s879_s21  ;;  %v443_v12 = vmul.f32 %v1058_v42, %v1153_v8  ;;  %v393_v17 = vmul.f32 %v1051_v34, %v1153_v8  ;;  %v383_v55 = vmul.f32 %v376_v29, %v1153_v8 }
  0x56   : > { %455 = vrot.lane.b32.xlu2 %v438_v1, %s879_s21  ;;  %405 = vrot.lane.b32.xlu0 %v388_v2, %s879_s21  ;;  %v1155_v9 = vld [vmem:[#allocation2 + $0x38] sm:$0xf]  ;;  %v368_v1 = vmul.f32 %v366_v63, %v1129_v62 }
  0x57   : > { %v444_v13 = vmul.f32 %v1058_v42, %v1155_v9  ;;  %v394_v20 = vmul.f32 %v1051_v34, %v1155_v9  ;;  %v384_v40 = vmul.f32 %v376_v29, %v1155_v9 }
  0x58   : > { %v1157_v10 = vld [vmem:[#allocation2 + $0x28] sm:$0xf] }
  0x59   : > { %v442_v14 = vmul.f32 %v1058_v42, %v1157_v10  ;;  %v392_v15 = vmul.f32 %v1051_v34, %v1157_v10  ;;  %v486_v42 = vstv %s700_s26  ;;  %v382_v56 = vmul.f32 %v376_v29, %v1157_v10 }
  0x5a   : > { %v487_v19 = vmul.f32 %v486_v42, %v1116_v57  ;;  %v488_v21 = vmul.f32 %v486_v42, %v1129_v62  ;;  %v490_v22 = vmul.f32 %v486_v42, %v1127_v28  ;;  %v489_v24 = vmul.f32 %v486_v42, %v1110_v52 }
  0x5b   : > { %v494_v25 = vmul.f32 %v486_v42, %v1155_v9  ;;  %v491_v26 = vmul.f32 %v486_v42, %v1142_v3  ;;  %v492_v34 = vmul.f32 %v486_v42, %v1157_v10  ;;  %v493_v27 = vmul.f32 %v486_v42, %v1153_v8 }
  0x5c   : > { %v367_v62 = vmul.f32 %v366_v63, %v1116_v57 }
  0x5d   : > { %459 = vrot.lane.b32.xlu1 %v440_v4, %s879_s21 }
  0x5e   : > { %461 = vrot.lane.b32.xlu2 %v441_v5, %s879_s21  ;;  %457 = vrot.lane.b32.xlu0 %v439_v6, %s879_s21 }
  0x65   : > { %465 = vrot.lane.b32.xlu1 %v443_v12, %s879_s21 }
  0x66   : > { %467 = vrot.lane.b32.xlu2 %v444_v13, %s879_s21  ;;  %463 = vrot.lane.b32.xlu0 %v442_v14, %s879_s21 }
  0x6d   : > { %413 = vrot.lane.b32.xlu1 %v392_v15, %s879_s21 }
  0x6e   : > { %411 = vrot.lane.b32.xlu0 %v391_v16, %s879_s21  ;;  %415 = vrot.lane.b32.xlu2 %v393_v17, %s879_s21 }
  0x75   : > { %503 = vrot.lane.b32.xlu1 %v487_v19, %s880_s28 }
  0x76   : > { %417 = vrot.lane.b32.xlu0 %v394_v20, %s879_s21  ;;  %505 = vrot.lane.b32.xlu2 %v488_v21, %s880_s28  ;;  %v371_v20 = vmul.f32 %v366_v63, %v1142_v3  ;;  %v369_v21 = vmul.f32 %v366_v63, %v1110_v52  ;;  %v370_v3 = vmul.f32 %v366_v63, %v1127_v28 }
  0x77   : > { %v374_v52 = vmul.f32 %v366_v63, %v1155_v9 }
  0x7d   : > { %509 = vrot.lane.b32.xlu1 %v490_v22, %s880_s28 }
  0x7e   : > { %507 = vrot.lane.b32.xlu0 %v489_v24, %s880_s28  ;;  %511 = vrot.lane.b32.xlu2 %v491_v26, %s880_s28 }
  0x85   : > { %517 = vrot.lane.b32.xlu1 %v494_v25, %s880_s28 }
  0x86   : > { %513 = vrot.lane.b32.xlu0 %v492_v34, %s880_s28 }
  0x8e   : > { %515 = vrot.lane.b32.xlu0 %v493_v27, %s880_s28 }
  0xa8   : > { %v454_v31 = vpop.permute.xlu2 %453 }
  0xa9   : > { %v477_v32 = vadd.f32 %v454_v31, %v377_v30 }
  0xab   : > { %543 = vrot.lane.b32.xlu1 %v477_v32, %s881_s29  ;;  %v372_v32 = vmul.f32 %v366_v63, %v1157_v10 }
  0xb0   : > { %v456_v35 = vpop.permute.xlu2 %455 }
  0xb1   : > { %v478_v36 = vadd.f32 %v456_v35, %v378_v33 }
  0xb3   : > { %545 = vrot.lane.b32.xlu2 %v478_v36, %s881_s29 }
  0xb8   : > { %v462_v38 = vpop.permute.xlu2 %461 }
  0xb9   : > { %v481_v39 = vadd.f32 %v462_v38, %v381_v37  ;;  %v373_v38 = vmul.f32 %v366_v63, %v1153_v8 }
  0xbb   : > { %551 = vrot.lane.b32.xlu1 %v481_v39, %s881_s29 }
  0xbf   : > { %v408_v41 = vpop.permute.xlu1 %407 }
  0xc0   : > { %v468_v43 = vpop.permute.xlu2 %467  ;;  %v404_v44 = vpop.permute.xlu0 %403  ;;  %v429_v25 = vadd.f32 %v408_v41, %v369_v21 }
  0xc1   : > { %v484_v45 = vadd.f32 %v468_v43, %v384_v40  ;;  %v427_v15 = vadd.f32 %v404_v44, %v367_v62 }
  0xc3   : > { %557 = vrot.lane.b32.xlu1 %v484_v45, %s881_s29 }
  0xc7   : > { %v1196_v46 = vpop.permute.xlu1 %409 }
  0xc8   : > { %v406_v47 = vpop.permute.xlu0 %405  ;;  %v416_v59 = vpop.permute.xlu2 %415  ;;  %v430_v36 = vadd.f32 %v1196_v46, %v370_v3 }
  0xc9   : > { %v428_v2 = vadd.f32 %v406_v47, %v368_v1  ;;  %v433_v47 = vadd.f32 %v416_v59, %v373_v38 }
  0xcf   : > { %v460_v50 = vpop.permute.xlu1 %459 }
  0xd0   : > { %v480_v51 = vadd.f32 %v460_v50, %v380_v48  ;;  %v458_v53 = vpop.permute.xlu0 %457  ;;  %v506_v23 = vpop.permute.xlu2 %505 }
  0xd1   : > { %v479_v54 = vadd.f32 %v458_v53, %v379_v49  ;;  %v528_v5 = vadd.f32 %v506_v23, %v428_v2 }
  0xd2   : > { %549 = vrot.lane.b32.xlu0 %v480_v51, %s881_s29 }
  0xd3   : > { %547 = vrot.lane.b32.xlu2 %v479_v54, %s881_s29 }
  0xd7   : > { %v466_v7 = vpop.permute.xlu1 %465 }
  0xd8   : > { %v483_v11 = vadd.f32 %v466_v7, %v383_v55  ;;  %v464_v58 = vpop.permute.xlu0 %463  ;;  %v512_v0 = vpop.permute.xlu2 %511 }
  0xd9   : > { %v482_v18 = vadd.f32 %v464_v58, %v382_v56 }
  0xda   : > { %555 = vrot.lane.b32.xlu0 %v483_v11, %s881_s29 }
  0xdb   : > { %553 = vrot.lane.b32.xlu2 %v482_v18, %s881_s29 }
  0xdf   : > { %v414_v60 = vpop.permute.xlu1 %413 }
  0xe0   : > { %v412_v14 = vpop.permute.xlu0 %411  ;;  %v432_v35 = vadd.f32 %v414_v60, %v372_v32 }
  0xe1   : > { %v431_v22 = vadd.f32 %v412_v14, %v371_v20 }
  0xe3   : > { %v531_v34 = vadd.f32 %v512_v0, %v431_v22 }
  0xe7   : > { %v504_v61 = vpop.permute.xlu1 %503 }
  0xe8   : > { %v527_v16 = vadd.f32 %v504_v61, %v427_v15  ;;  %v418_v19 = vpop.permute.xlu0 %417 }
  0xe9   : > { %v434_v37 = vadd.f32 %v418_v19, %v374_v52 }
  0xef   : > { %v510_v4 = vpop.permute.xlu1 %509 }
  0xf0   : > { %v508_v24 = vpop.permute.xlu0 %507  ;;  %v530_v39 = vadd.f32 %v510_v4, %v430_v36 }
  0xf1   : > { %v529_v26 = vadd.f32 %v508_v24, %v429_v25 }
  0xf7   : > { %v518_v13 = vpop.permute.xlu1 %517 }
  0xf8   : > { %v514_v31 = vpop.permute.xlu0 %513  ;;  %v534_v44 = vadd.f32 %v518_v13, %v434_v37 }
  0xf9   : > { %v532_v41 = vadd.f32 %v514_v31, %v432_v35 }
 0x100   : > { %v516_v33 = vpop.permute.xlu0 %515 }
 0x101   : > { %v533_v9 = vadd.f32 %v516_v33, %v433_v47 }
 0x10d   : > { %v546_v6 = vpop.permute.xlu2 %545 }
 0x10e   : > { %v568_v12 = vadd.f32 %v546_v6, %v528_v5 }
 0x110   : > { %578 = vst.msk [vmem:[%s1212_s9 + $0x8] sm:$0xf] %vm577_vm2, %v568_v12 }
 0x11d   : > { %v544_v17 = vpop.permute.xlu1 %543 }
 0x11e   : > { %v567_v42 = vadd.f32 %v544_v17, %v527_v16 }
 0x120   : > { %576 = vst.msk [vmem:[%s1212_s9] sm:$0xff] %vm575_vm3, %v567_v42 }
 0x12d   : > { %v548_v57 = vpop.permute.xlu2 %547  ;;  %v552_v27 = vpop.permute.xlu1 %551 }
 0x12e   : > { %v569_v29 = vadd.f32 %v548_v57, %v529_v26  ;;  %v571_v30 = vadd.f32 %v552_v27, %v531_v34 }
 0x130   : > { %579 = vst.msk [vmem:[%s1212_s9 + $0x10] sm:$0xff] %vm575_vm3, %v569_v29 }
 0x131   : > { %581 = vst.msk [vmem:[%s1212_s9 + $0x20] sm:$0xff] %vm575_vm3, %v571_v30 }
 0x135   : > { %v554_v40 = vpop.permute.xlu2 %553  ;;  %v558_v43 = vpop.permute.xlu1 %557 }
 0x136   : > { %v572_v28 = vadd.f32 %v554_v40, %v532_v41  ;;  %v574_v48 = vadd.f32 %v558_v43, %v534_v44 }
 0x138   : > { %582 = vst.msk [vmem:[%s1212_s9 + $0x28] sm:$0xf] %vm577_vm2, %v572_v28 }
 0x139   : > { %584 = vst.msk [vmem:[%s1212_s9 + $0x38] sm:$0xf] %vm577_vm2, %v574_v48 }
 0x144   : > { %v550_v10 = vpop.permute.xlu0 %549 }
 0x145   : > { %v570_v45 = vadd.f32 %v550_v10, %v530_v39 }
 0x147   : > { %580 = vst.msk [vmem:[%s1212_s9 + $0x18] sm:$0xf] %vm577_vm2, %v570_v45 }
 0x14c   : > { %v556_v46 = vpop.permute.xlu0 %555 }
 0x14d   : > { %v573_v8 = vadd.f32 %v556_v46, %v533_v9 }
 0x14f   : > { %583 = vst.msk [vmem:[%s1212_s9 + $0x30] sm:$0xff] %vm575_vm3, %v573_v8 }
 0x150 PF: > { %p15_p8 = scmp.ge.s32.totalorder %s922_s17, 4   ;;  %s1260_s12 = smov %s865_s13 }
 0x151   : > { %s1261_s13 = smov %s869_s14  ;;  %s1262_s14 = smov %s932_s20 }
 0x152   : > { %s1263_s15 = smov %s922_s17  ;;  %17 = sbr.rel (!%p15_p8) target bundleno = 5 (0x5), region = 81 }
 0x157   :  { %609 = vsyncpa [#allocation4], 1 }
 0x158   :  { %611 = vsyncpa [#allocation4 + $0x1], 1 }
 0x159   :  { %612 = vsyncpa [#allocation5], 1 }
 0x15a   :  { %614 = vsyncpa [#allocation5 + $0x1], 1 }
 0x15b   :  { %615 = vsyncpa [#allocation7], 1 }

</bundles_post_ra>
